<compile_context>
chip_gen: v6e
topology: v6e:2x2x1
jax: 0.10.0
libtpu: 0.0.40
codegen_flags: <defaults>
</compile_context>

<pallas_src>
import functools

import jax
import jax.numpy as jnp
from jax.experimental import pallas as pl
from jax.experimental.pallas import tpu as pltpu


def _round_up(x, m):
    return ((x + m - 1) // m) * m


def _mlp_kernel(x_ref, w1_ref, b1_ref, w2_ref, b2_ref, y_ref, *,
                softmax, matmul_dtype):
    x = x_ref[...]
    if matmul_dtype is not None:
        # Weights already arrive pre-cast from the wrapper; only the per-step
        # activations are converted here.
        x = x.astype(matmul_dtype)

    # fc1 + ReLU (f32 accumulation on the MXU; bias add / relu in f32)
    h = jnp.dot(x, w1_ref[...], preferred_element_type=jnp.float32)
    h = jnp.maximum(h + b1_ref[...], 0.0)
    if matmul_dtype is not None:
        h = h.astype(matmul_dtype)

    # fc2
    y = jnp.dot(h, w2_ref[...], preferred_element_type=jnp.float32)
    y = y + b2_ref[...]

    if softmax:
        m = jnp.max(y, axis=-1, keepdims=True)
        e = jnp.exp(y - m)
        denom = jnp.sum(e, axis=-1, keepdims=True)
        r = pl.reciprocal(denom, approx=True)   # EUP vrcp (free slot)
        r = r * (2.0 - denom * r)               # one Newton step -> ~f32 accurate
        y = e * r
        y = jnp.clip(y, 1e-9, 1.0 - 1e-9)

    y_ref[...] = y.astype(y_ref.dtype)


def mlp_forward(x, w1, b1, w2, b2, *, softmax=False, matmul_dtype=None,
                block_b=4096):
    """Fused fc1 -> relu -> fc2 (-> softmax/clamp) in a single pallas_call.

    The batch is tiled along a 1-D grid (<= block_b rows per step, multiple of
    8, and capped at ~ceil(B/2) so the grid has >= 2 parallel steps when
    possible).  The tiny weights/biases stay VMEM-resident across grid steps;
    the output is written at its true width (no padded slab, no wrapper slice).
    """
    B, n_in = x.shape
    n_hid = w1.shape[1]
    n_out = w2.shape[1]

    if matmul_dtype is not None:
        # Cast resident weights once here (not per grid step in the kernel).
        w1 = w1.astype(matmul_dtype)
        w2 = w2.astype(matmul_dtype)

    # Batch tile: multiple of 8 sublanes, <= block_b, and small enough that
    # the grid has >= 2 steps whenever B > 8 (keeps both v7x TCs busy).
    if B <= 8:
        tb = B                       # block dim == full array dim is legal
    else:
        tb = min(_round_up(block_b, 8), _round_up((B + 1) // 2, 8))

    grid = (pl.cdiv(B, tb),)

    flops = 2 * B * (n_in * n_hid + n_hid * n_out)
    itemsize = jnp.dtype(x.dtype).itemsize
    bytes_accessed = itemsize * (x.size + w1.size + b1.size + w2.size
                                 + b2.size + B * n_out)
    transcendentals = B * n_out if softmax else 0

    kernel = functools.partial(_mlp_kernel, softmax=softmax,
                               matmul_dtype=matmul_dtype)

    return pl.pallas_call(
        kernel,
        out_shape=jax.ShapeDtypeStruct((B, n_out), x.dtype),
        grid_spec=pltpu.PrefetchScalarGridSpec(
            num_scalar_prefetch=0,
            grid=grid,
            in_specs=[
                pl.BlockSpec((tb, n_in), lambda i: (i, 0)),      # x tile
                pl.BlockSpec((n_in, n_hid), lambda i: (0, 0)),   # w1 (resident)
                pl.BlockSpec((1, n_hid), lambda i: (0, 0)),      # b1 (resident)
                pl.BlockSpec((n_hid, n_out), lambda i: (0, 0)),  # w2 (resident)
                pl.BlockSpec((1, n_out), lambda i: (0, 0)),      # b2 (resident)
            ],
            out_specs=pl.BlockSpec((tb, n_out), lambda i: (i, 0)),
        ),
        compiler_params=pltpu.CompilerParams(
            dimension_semantics=("parallel",),   # megacore sharding on v7x
        ),
        cost_estimate=pl.CostEstimate(
            flops=flops,
            transcendentals=transcendentals,
            bytes_accessed=bytes_accessed,
        ),
    )(x, w1, b1, w2, b2)


def init_params(key, n_inputs, n_hidden, n_outputs, dtype=jnp.float32):
    """Deterministic init mimicking nn.Linear default (uniform +/- 1/sqrt(fan_in))."""
    k1, k2, k3, k4 = jax.random.split(key, 4)
    bound1 = 1.0 / jnp.sqrt(jnp.asarray(n_inputs, dtype))
    bound2 = 1.0 / jnp.sqrt(jnp.asarray(n_hidden, dtype))
    # Stored as (in, out) = transpose of PyTorch's (out, in)
    w1 = jax.random.uniform(k1, (n_inputs, n_hidden), dtype, -bound1, bound1)
    b1 = jax.random.uniform(k2, (1, n_hidden), dtype, -bound1, bound1)
    w2 = jax.random.uniform(k3, (n_hidden, n_outputs), dtype, -bound2, bound2)
    b2 = jax.random.uniform(k4, (1, n_outputs), dtype, -bound2, bound2)
    return w1, b1, w2, b2


def reference_forward(x, w1, b1, w2, b2, *, softmax=False):
    h = jnp.maximum(x @ w1 + b1, 0.0)
    y = h @ w2 + b2
    if softmax:
        y = jax.nn.softmax(y, axis=-1)
        y = jnp.clip(y, 1e-9, 1.0 - 1e-9)
    return y


# TODO(synk): the Adam optimizer / training step of the PyTorch Model is out of
# scope here; only the forward pass is implemented.

if __name__ == "__main__":
    n_inputs, n_hidden, n_outputs = 16, 64, 4

    key = jax.random.PRNGKey(0)
    kx, kp, kx2 = jax.random.split(key, 3)
    w1, b1, w2, b2 = init_params(kp, n_inputs, n_hidden, n_outputs)

    # --- Test 1: single-tile batch, both softmax modes ---------------------
    batch = 8
    x = jax.random.normal(kx, (batch, n_inputs), jnp.float32)

    y = jax.block_until_ready(mlp_forward(x, w1, b1, w2, b2, softmax=False))
    y_sm = jax.block_until_ready(mlp_forward(x, w1, b1, w2, b2, softmax=True))

    y_ref = reference_forward(x, w1, b1, w2, b2, softmax=False)
    y_sm_ref = reference_forward(x, w1, b1, w2, b2, softmax=True)
    assert y.shape == (batch, n_outputs)
    assert y_sm.shape == (batch, n_outputs)
    assert jnp.allclose(y, y_ref, atol=1e-5, rtol=1e-5)
    assert jnp.allclose(y_sm, y_sm_ref, atol=1e-4, rtol=1e-4)

    # --- Test 2: multi-step grid with a ragged final block -----------------
    batch2 = 200                      # not a multiple of the 64-row tile
    x2 = jax.random.normal(kx2, (batch2, n_inputs), jnp.float32)

    y2 = jax.block_until_ready(
        mlp_forward(x2, w1, b1, w2, b2, softmax=True, block_b=64))
    y2_ref = reference_forward(x2, w1, b1, w2, b2, softmax=True)
    assert y2.shape == (batch2, n_outputs)
    assert jnp.allclose(y2, y2_ref, atol=1e-4, rtol=1e-4)

    # --- Test 3: default (large) tile, auto 2-step grid for v7x megacore ---
    y3 = jax.block_until_ready(mlp_forward(x2, w1, b1, w2, b2, softmax=False))
    y3_ref = reference_forward(x2, w1, b1, w2, b2, softmax=False)
    assert jnp.allclose(y3, y3_ref, atol=1e-5, rtol=1e-5)

    print("KERNEL_OK")
</pallas_src>

<mosaic_0001>
module attributes {stable_mosaic.version = 11 : i64} {
  func.func @_mlp_kernel(%arg0: i32, %arg1: memref<8x16xf32, #tpu.memory_space<vmem>>, %arg2: memref<16x64xf32, #tpu.memory_space<vmem>>, %arg3: memref<1x64xf32, #tpu.memory_space<vmem>>, %arg4: memref<64x4xf32, #tpu.memory_space<vmem>>, %arg5: memref<1x4xf32, #tpu.memory_space<vmem>>, %arg6: memref<8x4xf32, #tpu.memory_space<vmem>>) attributes {dimension_semantics = [#tpu.dimension_semantics<parallel>], iteration_bounds = array<i64: 1>, scalar_prefetch = 0 : i64, scratch_operands = 0 : i64, tpu.core_type = #tpu.core_type<tc>, window_params = [{transform_indices = @transform_0, window_bounds = array<i64: 8, 16>}, {pipeline_mode = #tpu.pipeline_mode<synchronous>, transform_indices = @transform_1, window_bounds = array<i64: 16, 64>}, {pipeline_mode = #tpu.pipeline_mode<synchronous>, transform_indices = @transform_2, window_bounds = array<i64: 1, 64>}, {pipeline_mode = #tpu.pipeline_mode<synchronous>, transform_indices = @transform_3, window_bounds = array<i64: 64, 4>}, {pipeline_mode = #tpu.pipeline_mode<synchronous>, transform_indices = @transform_4, window_bounds = array<i64: 1, 4>}, {transform_indices = @transform_5, window_bounds = array<i64: 8, 4>}]} {
    %c0 = arith.constant 0 : index
    %c0_0 = arith.constant 0 : index
    %0 = vector.load %arg1[%c0, %c0_0] : memref<8x16xf32, #tpu.memory_space<vmem>>, vector<8x16xf32>
    %c0_1 = arith.constant 0 : index
    %c0_2 = arith.constant 0 : index
    %1 = vector.load %arg2[%c0_1, %c0_2] : memref<16x64xf32, #tpu.memory_space<vmem>>, vector<16x64xf32>
    %cst = arith.constant dense<0.000000e+00> : vector<8x64xf32>
    %2 = tpu.matmul %0, %1, %cst {dimension_numbers = #tpu.dot_dimension_numbers<[1], [0], [0], [1], [0, 0, 1, 1], [], []>} : vector<8x16xf32>, vector<16x64xf32>, vector<8x64xf32> -> vector<8x64xf32>
    %c0_3 = arith.constant 0 : index
    %c0_4 = arith.constant 0 : index
    %3 = vector.load %arg3[%c0_3, %c0_4] : memref<1x64xf32, #tpu.memory_space<vmem>>, vector<1x64xf32>
    %4 = vector.broadcast %3 : vector<1x64xf32> to vector<8x64xf32>
    %5 = arith.addf %2, %4 : vector<8x64xf32>
    %cst_5 = arith.constant 0.000000e+00 : f32
    %6 = vector.broadcast %cst_5 : f32 to vector<8x64xf32>
    %7 = arith.maximumf %5, %6 : vector<8x64xf32>
    %c0_6 = arith.constant 0 : index
    %c0_7 = arith.constant 0 : index
    %8 = vector.load %arg4[%c0_6, %c0_7] : memref<64x4xf32, #tpu.memory_space<vmem>>, vector<64x4xf32>
    %cst_8 = arith.constant dense<0.000000e+00> : vector<8x4xf32>
    %9 = tpu.matmul %7, %8, %cst_8 {dimension_numbers = #tpu.dot_dimension_numbers<[1], [0], [0], [1], [0, 0, 1, 1], [], []>} : vector<8x64xf32>, vector<64x4xf32>, vector<8x4xf32> -> vector<8x4xf32>
    %c0_9 = arith.constant 0 : index
    %c0_10 = arith.constant 0 : index
    %10 = vector.load %arg5[%c0_9, %c0_10] : memref<1x4xf32, #tpu.memory_space<vmem>>, vector<1x4xf32>
    %11 = vector.broadcast %10 : vector<1x4xf32> to vector<8x4xf32>
    %12 = arith.addf %9, %11 : vector<8x4xf32>
    %c0_11 = arith.constant 0 : index
    %c0_12 = arith.constant 0 : index
    %13 = vector.load %arg6[%c0_11, %c0_12] : memref<8x4xf32, #tpu.memory_space<vmem>>, vector<8x4xf32>
    tpu.vector_store %arg6[%c0_11, %c0_12], %12 {strides = array<i32>} : memref<8x4xf32, #tpu.memory_space<vmem>>, vector<8x4xf32>,
    return
  }
  func.func @transform_0(%arg0: i32) -> (i32, i32) {
    %c0_i32 = arith.constant 0 : i32
    %c0_i32_0 = arith.constant 0 : i32
    return %arg0, %c0_i32 : i32, i32
  }
  func.func @transform_1(%arg0: i32) -> (i32, i32) {
    %c0_i32 = arith.constant 0 : i32
    %c0_i32_0 = arith.constant 0 : i32
    %c0_i32_1 = arith.constant 0 : i32
    return %c0_i32, %c0_i32_0 : i32, i32
  }
  func.func @transform_2(%arg0: i32) -> (i32, i32) {
    %c0_i32 = arith.constant 0 : i32
    %c0_i32_0 = arith.constant 0 : i32
    %c0_i32_1 = arith.constant 0 : i32
    return %c0_i32, %c0_i32_0 : i32, i32
  }
  func.func @transform_3(%arg0: i32) -> (i32, i32) {
    %c0_i32 = arith.constant 0 : i32
    %c0_i32_0 = arith.constant 0 : i32
    %c0_i32_1 = arith.constant 0 : i32
    return %c0_i32, %c0_i32_0 : i32, i32
  }
  func.func @transform_4(%arg0: i32) -> (i32, i32) {
    %c0_i32 = arith.constant 0 : i32
    %c0_i32_0 = arith.constant 0 : i32
    %c0_i32_1 = arith.constant 0 : i32
    return %c0_i32, %c0_i32_0 : i32, i32
  }
  func.func @transform_5(%arg0: i32) -> (i32, i32) {
    %c0_i32 = arith.constant 0 : i32
    %c0_i32_0 = arith.constant 0 : i32
    return %arg0, %c0_i32 : i32, i32
  }
}

</mosaic_0001>

<bundles_post_ra>
// kernel: tpu_custom_call.1
= control target key start
LH: loop header
LB: loop body
LE: loop exit
PB: predicated region body
PF: predicated region fallthrough
CT: control target
= control target key end

     0   :  { %v244_v0 = vmov 0.0   ;;  %vm245_vm0 = vmmov 0   ;;  %vm30_vm1 = vcmask 130048   ;;  %vm120_vm2 = vcmask 523264   ;;  %s320_s1 = inlined_call_operand.vmem [shape: f32[16,64], index: 1, kind: input, shape index: {}]   ;;  %s321_s0 = inlined_call_operand.vmem [shape: f32[8,16], index: 0, kind: input, shape index: {}]   ;;  %s322_s3 = inlined_call_operand.vmem [shape: f32[64,4], index: 3, kind: input, shape index: {}]   ;;  %s323_s2 = inlined_call_operand.vmem [shape: f32[1,64], index: 2, kind: input, shape index: {}]   ;;  %s324_s4 = inlined_call_operand.vmem [shape: f32[1,4], index: 4, kind: input, shape index: {}]   ;;  %s325_s5 = inlined_call_operand.vmem [shape: f32[8,4], index: 5, kind: output, shape index: {}]  }
   0x1   :  { %216 = vmatprep.subr.mxu0 %v244_v0  ;;  %v22_v1 = vld [vmem:[%s320_s1 + $0x8] sm:$0xff]  ;;  %v21_v2 = vld [vmem:[%s320_s1] sm:$0xff]  ;;  %220 = vmatprep.mubr.msk.f32.mxu0 %vm245_vm0, %v244_v0  ;;  %v112_v4 = vld [vmem:[%s322_s3 + $0x38] sm:$0xff]  ;;  %vm194_vm3 = vcmask 31744  }
   0x2   :  { %217 = vmatpush3.msra.mxu0 %v22_v1  ;;  %v20_v3 = vld [vmem:[%s321_s0] sm:$0xff]  ;;  %223 = vmatprep.subr.mxu1 %v244_v0  ;;  %v111_v5 = vld [vmem:[%s322_s3 + $0x30] sm:$0xff]  ;;  %v110_v6 = vld [vmem:[%s322_s3 + $0x28] sm:$0xff] }
   0x3   :  { %218 = vmatprep.subr.mxu0 %v244_v0  ;;  %224 = vmatpush3.msra.mxu1 %v112_v4  ;;  %v109_v7 = vld [vmem:[%s322_s3 + $0x20] sm:$0xff]  ;;  %v108_v8 = vld [vmem:[%s322_s3 + $0x18] sm:$0xff]  ;;  %v107_v9 = vld [vmem:[%s322_s3 + $0x10] sm:$0xff] }
   0x4   :  { %219 = vmatpush3.msra.mxu0 %v21_v2  ;;  %225 = vmatprep.subr.mxu1 %v244_v0  ;;  %v106_v10 = vld [vmem:[%s322_s3 + $0x8] sm:$0xff]  ;;  %v105_v11 = vld [vmem:[%s322_s3] sm:$0xff] }
   0x5   :  { %221 = vmatmul.mubr.msk.f32.vlgmr.msra.gmra.mxu0 %vm30_vm1, %v20_v3  ;;  %226 = vmatpush3.msra.mxu1 %v111_v5  ;;  %v200_v12 = vld [vmem:[%s323_s2] ss:$0 sm:$0xff] }
   0x6   :  { %227 = vmatprep.subr.mxu1 %v244_v0  ;;  %239 = vmatprep.mubr.msk.f32.mxu1 %vm245_vm0, %v244_v0  ;;  %v202_v17 = vld [vmem:[%s324_s4] ss:$0 sm:$0xff] }
   0x7   :  { %228 = vmatpush3.msra.mxu1 %v110_v6 }
   0x8   :  { %229 = vmatprep.subr.mxu1 %v244_v0 }
   0x9   :  { %230 = vmatpush3.msra.mxu1 %v109_v7 }
   0xa   :  { %231 = vmatprep.subr.mxu1 %v244_v0 }
   0xb   :  { %232 = vmatpush3.msra.mxu1 %v108_v8 }
   0xc   :  { %233 = vmatprep.subr.mxu1 %v244_v0 }
   0xd   :  { %234 = vmatpush3.msra.mxu1 %v107_v9 }
   0xe   :  { %235 = vmatprep.subr.mxu1 %v244_v0 }
   0xf   :  { %236 = vmatpush3.msra.mxu1 %v106_v10 }
  0x10   :  { %237 = vmatprep.subr.mxu1 %v244_v0 }
  0x11   :  { %238 = vmatpush3.msra.mxu1 %v105_v11 }
  0xc5   :  { %v100_v13 = vpop.f32.mrf.mxu0 }
  0xc6   :  { %v101_v14 = vadd.f32 %v200_v12, %v100_v13 }
  0xc7   :  { %v222_v15 = vpop.f32.mrf.mxu0 }
  0xc8   :  { %v104_v16 = vmax.f32 %v101_v14, 0.0 }
  0xca   :  { %240 = vmatmul.mubr.msk.f32.vlgmr.msra.gmra.mxu1 %vm120_vm2, %v104_v16 }
 0x18a   :  { %v190_v18 = vpop.f32.mrf.mxu1 }
 0x18b   :  { %v191_v19 = vadd.f32 %v202_v17, %v190_v18 }
 0x18c   :  { %v241_v20 = vpop.f32.mrf.mxu1 }
 0x18d   :  { %195 = vst.msk [vmem:[%s325_s5] sm:$0xff] %vm194_vm3, %v191_v19 }

</bundles_post_ra>
